<compile_context>
chip_gen: v7x
topology: tpu7x:2x2x1
jax: 0.10.0
libtpu: 0.0.40
codegen_flags: <defaults>
</compile_context>

<pallas_src>
import math

import jax
import jax.numpy as jnp
from jax.experimental import pallas as pl
from jax.experimental.pallas import tpu as pltpu


def build_positional_encoding(d_model: int, max_len: int = 5000,
                              dtype=jnp.float32) -> jnp.ndarray:
    """Deterministic sinusoidal PE buffer, same math as the PyTorch __init__."""
    position = jnp.arange(0, max_len, dtype=jnp.float32)[:, None]          # (max_len, 1)
    div_term = jnp.exp(
        jnp.arange(0, d_model, 2, dtype=jnp.float32)
        * -(jnp.log(jnp.float32(10000.0)) / d_model)
    )                                                                       # (ceil(D/2),)
    angles = position * div_term                                            # (max_len, ceil(D/2))
    pe = jnp.zeros((max_len, d_model), dtype=jnp.float32)
    pe = pe.at[:, 0::2].set(jnp.sin(angles))
    pe = pe.at[:, 1::2].set(jnp.cos(angles[:, : d_model // 2]))  # safe for odd d_model
    return pe.astype(dtype)                                                 # (max_len, D)


def _pe_add_kernel(x_ref, pe_ref, o_ref):
    # Folded-batch path:  x/o are (B, ts, Dr), pe is (ts, Dr) -> broadcast add.
    # Squeezed-batch path: all refs are (ts, Dr) -> pure 2-load / 1-store add.
    o_ref[...] = x_ref[...] + pe_ref[...]


_DEFAULT_TILE_BYTES = 4 * 1024 * 1024      # ~4 MiB x/out tile (amortizes ~0.35us/step)
_DEFAULT_MIN_PALLAS_BYTES = 256 * 1024     # below this, let XLA fuse the add
_MAX_FOLD_BATCH = 8                        # fold batch into the block for B <= this


class PositionalEncodingPallas:
    """Pallas-backed equivalent of the PyTorch PositionalEncoding module."""

    def __init__(self, d_model: int, max_len: int = 5000):
        self.d_model = d_model
        self.max_len = max_len

        # Lane-packing factor depends only on D: Dr = k*D = lcm(D, 128).
        k = 1
        if d_model % 128 != 0:
            k = 128 // math.gcd(d_model, 128)
        self.k = k

        # Build the f32 buffer once; pad rows so max_len is a multiple of k
        # (lets the kernel index the *full* packed buffer through BlockSpecs).
        ml_pad = -(-max_len // k) * k
        pe = build_positional_encoding(d_model, max_len, dtype=jnp.float32)
        if ml_pad != max_len:
            pe = jnp.pad(pe, ((0, ml_pad - max_len), (0, 0)))
        self._ml_pad = ml_pad
        self._pe_f32 = pe                  # (ml_pad, D) float32 "register_buffer"
        self._packed_cache = {}            # dtype -> (ml_pad // k, D * k), cast + packed

    def _packed_pe(self, dtype) -> jnp.ndarray:
        """Cached pre-cast / pre-packed PE; the cast is NOT on the hot path."""
        dtype = jnp.dtype(dtype)
        pe = self._packed_cache.get(dtype)
        if pe is None:
            pe = self._pe_f32.astype(dtype).reshape(
                self._ml_pad // self.k, self.d_model * self.k)
            self._packed_cache[dtype] = pe
        return pe

    def __call__(self, x: jnp.ndarray, *,
                 tile_bytes: int = _DEFAULT_TILE_BYTES,
                 min_pallas_bytes: int = _DEFAULT_MIN_PALLAS_BYTES,
                 donate_x: bool = False) -> jnp.ndarray:
        """x: (B, S, D).  Returns x + pe[:S] broadcast over batch, in x.dtype."""
        B, S, D = x.shape
        assert D == self.d_model, "pe buffer d_model mismatch"
        assert S <= self.max_len, "sequence length exceeds max_len of the pe buffer"

        dtype = x.dtype
        itemsize = jnp.dtype(dtype).itemsize
        k = self.k
        Dr = D * k
        pe_packed = self._packed_pe(dtype)       # (ml_pad // k, Dr), cached

        # Tiny problems: a fused XLA broadcast-add beats kernel overhead.
        if x.size * itemsize < min_pallas_bytes:
            pe_rows = pe_packed.reshape(self._ml_pad, D)[:S]
            return x + pe_rows[None]

        # Pad S up to a multiple of k so stores stay lane-dense (Dr % 128 == 0),
        # then slice back after the kernel (pad cost << lane-sparse stream).
        S_pad = -(-S // k) * k
        x_in = x if S_pad == S else jnp.pad(x, ((0, 0), (0, S_pad - S), (0, 0)))
        Sr = S_pad // k
        x_r = x_in.reshape(B, Sr, Dr)            # contiguous (free) relayout

        fold_batch = B <= _MAX_FOLD_BATCH
        # Sequence-tile size (packed rows): multiple of 8 sublanes, sized so
        # the x/out block is ~tile_bytes (batch included when folded).
        row_bytes = (B if fold_batch else 1) * Dr * itemsize
        ts = max(8, (tile_bytes // row_bytes) // 8 * 8)
        ts = min(ts, Sr)

        if ts % 8 == 0:
            # Full packed PE buffer; rows selected through the index_map
            # (no per-call pe[:S] copy in HBM).
            pe_in = pe_packed
        else:
            # Sr < 8 (or < one aligned tile): single full-extent block; a tiny
            # pe slice keeps the pe BlockSpec full-extent as well.
            ts = Sr
            pe_in = pe_packed[:Sr]
        num_s_tiles = pl.cdiv(Sr, ts)

        # Explicit VMEM budget: double-buffered x + pe + out blocks, plus
        # headroom.  v5e scoped default is only 16 MiB, so never leave this
        # implicit; cap well under v7x's 64 MiB/TC physical VMEM.
        x_block_bytes = (B if fold_batch else 1) * ts * Dr * itemsize
        pe_block_bytes = ts * Dr * itemsize
        live_bytes = 2 * (2 * x_block_bytes + pe_block_bytes)
        vmem_limit = int(min(max(live_bytes + (8 << 20), 16 << 20), 56 << 20))

        cost = pl.CostEstimate(
            flops=B * S * D,
            transcendentals=0,
            bytes_accessed=(2 * B * S * D + S * D) * itemsize,
        )

        if fold_batch:
            # One grid step per S-tile: B-fold fewer steps, pe fetched once/tile.
            grid = (num_s_tiles,)
            in_specs = [
                pl.BlockSpec((B, ts, Dr), lambda s: (0, s, 0)),
                pl.BlockSpec((ts, Dr), lambda s: (s, 0)),
            ]
            out_specs = pl.BlockSpec((B, ts, Dr), lambda s: (0, s, 0))
            dim_sem = ("parallel",)
        else:
            # B innermost: pe's block index depends only on the S-tile, so its
            # DMA is skipped across the inner batch loop.  Batch dim squeezed.
            grid = (num_s_tiles, B)
            in_specs = [
                pl.BlockSpec((None, ts, Dr), lambda s, b: (b, s, 0)),
                pl.BlockSpec((ts, Dr), lambda s, b: (s, 0)),
            ]
            out_specs = pl.BlockSpec((None, ts, Dr), lambda s, b: (b, s, 0))
            dim_sem = ("parallel", "parallel")

        out = pl.pallas_call(
            _pe_add_kernel,
            out_shape=jax.ShapeDtypeStruct((B, Sr, Dr), dtype),
            grid_spec=pltpu.PrefetchScalarGridSpec(
                num_scalar_prefetch=0,
                grid=grid,
                in_specs=in_specs,
                out_specs=out_specs,
            ),
            compiler_params=pltpu.CompilerParams(
                dimension_semantics=dim_sem,
                vmem_limit_bytes=vmem_limit,
            ),
            cost_estimate=cost,
            input_output_aliases=({0: 0} if donate_x else {}),
        )(x_r, pe_in)

        out = out.reshape(B, S_pad, D)
        if S_pad != S:
            out = out[:, :S, :]
        return out


if __name__ == "__main__":
    d_model = 32
    max_len = 5000
    batch, seq = 2, 8

    posenc = PositionalEncodingPallas(d_model, max_len=max_len)
    pe_ref = build_positional_encoding(d_model, max_len)          # f32 reference buffer

    key = jax.random.PRNGKey(0)
    x = jax.random.normal(key, (batch, seq, d_model), dtype=jnp.float32)
    ref = x + pe_ref[None, :seq, :]

    # 1) Module-spec shape, forced through the Pallas path (lane packing
    #    D=32 -> k=4, Sr<8 full-extent block, folded batch).
    out = jax.block_until_ready(posenc(x, min_pallas_bytes=0))
    assert out.shape == x.shape and out.dtype == x.dtype
    assert jnp.allclose(out, ref, atol=1e-6, rtol=1e-6)

    # 2) Lane-aligned D, multi-tile S grid with a partial last tile, folded
    #    batch, full-pe index_map path, and input/output aliasing.
    posenc128 = PositionalEncodingPallas(128, max_len=max_len)
    pe128 = build_positional_encoding(128, max_len)
    x2 = jax.random.normal(jax.random.PRNGKey(0), (2, 200, 128), dtype=jnp.float32)
    ref2 = x2 + pe128[None, :200, :]
    out2 = jax.block_until_ready(
        posenc128(x2, tile_bytes=64 * 1024, min_pallas_bytes=0, donate_x=True))
    assert jnp.allclose(out2, ref2, atol=1e-6, rtol=1e-6)

    # 3) Larger batch -> squeezed-batch path with grid=(s_tiles, B).
    x3 = jax.random.normal(jax.random.PRNGKey(0), (16, 64, 128), dtype=jnp.float32)
    ref3 = x3 + pe128[None, :64, :]
    out3 = jax.block_until_ready(posenc128(x3, min_pallas_bytes=0))
    assert jnp.allclose(out3, ref3, atol=1e-6, rtol=1e-6)

    # 4) S not divisible by the packing factor -> wrapper-side pad + slice
    #    (keeps stores lane-dense instead of masked lane-sparse stores).
    x4 = jax.random.normal(jax.random.PRNGKey(0), (2, 10, d_model), dtype=jnp.float32)
    ref4 = x4 + pe_ref[None, :10, :]
    out4 = jax.block_until_ready(posenc(x4, min_pallas_bytes=0))
    assert out4.shape == x4.shape
    assert jnp.allclose(out4, ref4, atol=1e-6, rtol=1e-6)

    # 5) bf16 input stays bf16 (documented deviation from PyTorch's f32
    #    promotion); check against the f32 reference with a loose tolerance.
    x5 = x.astype(jnp.bfloat16)
    ref5 = x5.astype(jnp.float32) + pe_ref[None, :seq, :]
    out5 = jax.block_until_ready(posenc(x5, min_pallas_bytes=0))
    assert out5.dtype == jnp.bfloat16
    assert jnp.allclose(out5.astype(jnp.float32), ref5, atol=0.05, rtol=0.05)

    # 6) Default dispatch: tiny input falls back to the fused XLA add.
    out6 = jax.block_until_ready(posenc(x))
    assert jnp.allclose(out6, ref, atol=1e-6, rtol=1e-6)

    print("KERNEL_OK")
</pallas_src>

<mosaic_0001>
module attributes {stable_mosaic.version = 11 : i64} {
  func.func @_pe_add_kernel(%arg0: i32, %arg1: memref<2x2x128xf32, #tpu.memory_space<vmem>>, %arg2: memref<2x128xf32, #tpu.memory_space<vmem>>, %arg3: memref<2x2x128xf32, #tpu.memory_space<vmem>>) attributes {dimension_semantics = [#tpu.dimension_semantics<parallel>], iteration_bounds = array<i64: 1>, scalar_prefetch = 0 : i64, scratch_operands = 0 : i64, tpu.core_type = #tpu.core_type<tc>, window_params = [{transform_indices = @transform_0, window_bounds = array<i64: 2, 2, 128>}, {transform_indices = @transform_1, window_bounds = array<i64: 2, 128>}, {transform_indices = @transform_2, window_bounds = array<i64: 2, 2, 128>}]} {
    %c0 = arith.constant 0 : index
    %c0_0 = arith.constant 0 : index
    %c0_1 = arith.constant 0 : index
    %0 = vector.load %arg1[%c0, %c0_0, %c0_1] : memref<2x2x128xf32, #tpu.memory_space<vmem>>, vector<2x2x128xf32>
    %c0_2 = arith.constant 0 : index
    %c0_3 = arith.constant 0 : index
    %1 = vector.load %arg2[%c0_2, %c0_3] : memref<2x128xf32, #tpu.memory_space<vmem>>, vector<2x128xf32>
    %2 = vector.shape_cast %1 : vector<2x128xf32> to vector<1x2x128xf32>
    %3 = vector.broadcast %2 : vector<1x2x128xf32> to vector<2x2x128xf32>
    %4 = arith.addf %0, %3 : vector<2x2x128xf32>
    %c0_4 = arith.constant 0 : index
    %c0_5 = arith.constant 0 : index
    %c0_6 = arith.constant 0 : index
    %5 = vector.load %arg3[%c0_4, %c0_5, %c0_6] : memref<2x2x128xf32, #tpu.memory_space<vmem>>, vector<2x2x128xf32>
    tpu.vector_store %arg3[%c0_4, %c0_5, %c0_6], %4 {strides = array<i32>} : memref<2x2x128xf32, #tpu.memory_space<vmem>>, vector<2x2x128xf32>,
    return
  }
  func.func @transform_0(%arg0: i32) -> (i32, i32, i32) {
    %c0_i32 = arith.constant 0 : i32
    %c0_i32_0 = arith.constant 0 : i32
    %c0_i32_1 = arith.constant 0 : i32
    return %c0_i32, %arg0, %c0_i32_0 : i32, i32, i32
  }
  func.func @transform_1(%arg0: i32) -> (i32, i32) {
    %c0_i32 = arith.constant 0 : i32
    %c0_i32_0 = arith.constant 0 : i32
    return %arg0, %c0_i32 : i32, i32
  }
  func.func @transform_2(%arg0: i32) -> (i32, i32, i32) {
    %c0_i32 = arith.constant 0 : i32
    %c0_i32_0 = arith.constant 0 : i32
    %c0_i32_1 = arith.constant 0 : i32
    return %c0_i32, %arg0, %c0_i32_0 : i32, i32, i32
  }
}

</mosaic_0001>

<bundles_post_ra>
// kernel: tpu_custom_call.1
= control target key start
LH: loop header
LB: loop body
LE: loop exit
PB: predicated region body
PF: predicated region fallthrough
CT: control target
= control target key end

     0   :  { %7 = vsyncpa [#allocation3], 0  ;;  %s154_s0 = inlined_call_operand.hbm [shape: f32[2,2,128], index: 0, kind: input, shape index: {}]   ;;  %s155_s1 = inlined_call_operand.vmem [shape: f32[2,128], index: 1, kind: input, shape index: {}]   ;;  %s156_s2 = inlined_call_operand.hbm [shape: f32[2,2,128], index: 2, kind: output, shape index: {}]  }
   0x1   :  { %8 = vsyncpa [#allocation4], 0  ;;  %s102_s9 = smov [#allocation2]   ;;  %s54_s13 = scalar_lea.hbm %s154_s0, 64 }
   0x2   :  { %s14_s10 = sshll.u32 %s102_s9, 4  ;;  %p55_p0 = scmp.ne.s32.totalorder %s154_s0, %s54_s13  ;;  %s15_s10 = int_to_ptr.vmem [resolvable:$true] %s14_s10 }
   0x3   :  { %p58_p1 = scmp.lt.u32.totalorder %s54_s13, %s154_s0 }
   0x5   :  { %p60_p2 = pnand %p58_p1, %p55_p0 }
   0x7   :  { %63 = shalt.err (!%p60_p2)
}
   0x8   :  { %s64_s18 = scalar_lea.vmem %s15_s10, 64  ;;  %p69_p4 = scmp.lt.s32.totalorder %s15_s10, %s15_s10 }
   0x9   :  { %p65_p3 = scmp.ne.s32.totalorder %s15_s10, %s64_s18  ;;  %p70_p5 = scmp.lt.s32.totalorder %s64_s18, %s64_s18 }
   0xb   :  { %p71_p6 = por %p70_p5, %p69_p4 }
   0xd   :  { %p72_p7 = pnand %p71_p6, %p65_p3 }
   0xf   :  { %75 = shalt.err (!%p72_p7)
}
  0x10   :  { %s103_s19 = smov 32   ;;  %s104_s20 = smov 2  }
  0x11   :  { %20 = dma.hbm_to_vmem [thread:$0]  %s154_s0, 64, %s15_s10, [#allocation3], %s103_s19, %s103_s19, %s104_s20  }
  0x12   :  { %98 = dma.done.wait [#allocation3], 64  }
  0x13   :  { %99 = vsyncadd [#allocation3], 4294967232  ;;  %s105_s23 = smov [#allocation5]   ;;  %v26_v0 = vld [vmem:[#allocation2] sm:$0x3] }
  0x14   :  { %s38_s24 = sshll.u32 %s105_s23, 4  ;;  %v28_v1 = vld [vmem:[%s155_s1] sm:$0x3]  ;;  %v27_v2 = vld [vmem:[#allocation2 + $0x2] sm:$0x3]  ;;  %s39_s24 = int_to_ptr.vmem [resolvable:$true] %s38_s24 }
  0x15   :  { %v29_v3 = vadd.f32 %v28_v1, %v26_v0  ;;  %v30_v4 = vadd.f32 %v28_v1, %v27_v2  ;;  %s76_s27 = scalar_lea.vmem %s39_s24, 64  ;;  %p81_p9 = scmp.lt.s32.totalorder %s39_s24, %s39_s24 }
  0x16   :  { %p77_p8 = scmp.ne.s32.totalorder %s39_s24, %s76_s27  ;;  %p82_p10 = scmp.lt.s32.totalorder %s76_s27, %s76_s27 }
  0x17   :  { %31 = vst [vmem:[#allocation5] sm:$0x3] %v29_v3  ;;  %32 = vst [vmem:[#allocation5 + $0x2] sm:$0x3] %v30_v4 }
  0x18   :  { %p83_p11 = por %p82_p10, %p81_p9 }
  0x1a   :  { %p84_p12 = pnand %p83_p11, %p77_p8 }
  0x1c   :  { %87 = shalt.err (!%p84_p12)
}
  0x1d   :  { %s88_s29 = scalar_lea.hbm %s156_s2, 64 }
  0x1e   :  { %p89_p13 = scmp.ne.s32.totalorder %s156_s2, %s88_s29  ;;  %p92_p0 = scmp.lt.u32.totalorder %s88_s29, %s156_s2 }
  0x20   :  { %p94_p1 = pnand %p92_p0, %p89_p13 }
  0x22   :  { %97 = shalt.err (!%p94_p1)
}
  0x23   :  { %44 = dma.vmem_to_hbm [thread:$0]  %s39_s24, 64, %s156_s2, [#allocation4], %s103_s19, %s103_s19, %s104_s20  }
  0x24   :  { %100 = dma.done.wait [#allocation4], 64  }
  0x25   :  { %101 = vsyncadd [#allocation4], 4294967232 }
  0x26   :  { %48 = vsyncpa [#allocation3], 1 }
  0x27   :  { %49 = vsyncpa [#allocation4], 1 }

</bundles_post_ra>
